<compile_context>
chip_gen: v5e
topology: v5e:2x2
jax: 0.10.0
libtpu: 0.0.40
codegen_flags: <defaults>
</compile_context>

<pallas_src>
import functools

import jax
import jax.numpy as jnp
from jax.experimental import pallas as pl
from jax.experimental.pallas import tpu as pltpu

_VMEM_BUDGET = 40 * 1024 * 1024   # working-set target (fits v7x 64 MiB physical)
_VMEM_LIMIT = 48 * 1024 * 1024    # scoped VMEM limit handed to Mosaic


def _round_up(x, m):
    return (x + m - 1) // m * m


def _erf(z):
    # Abramowitz & Stegun 7.1.26 (|err| < 1.5e-7): matches torch.nn.GELU()'s
    # exact-erf GELU to f32 precision.  The divide goes to the EUP (approx
    # reciprocal) and is refined with one Newton step.
    a1, a2, a3, a4, a5 = (0.254829592, -0.284496736, 1.421413741,
                          -1.453152027, 1.061405429)
    p = 0.3275911
    sign = jnp.where(z < 0.0, -1.0, 1.0)
    az = jnp.abs(z)
    d = 1.0 + p * az
    r = pl.reciprocal(d, approx=True)
    t = r * (2.0 - d * r)                       # Newton refinement
    poly = t * (a1 + t * (a2 + t * (a3 + t * (a4 + t * a5))))
    return sign * (1.0 - poly * jnp.exp(-az * az))


def _gelu_exact(x):
    return 0.5 * x * (1.0 + _erf(x * 0.7071067811865476))


def _gelu_tanh(x):
    # tanh-approx GELU: a handful of VALU ops + one EUP tanh per element.
    c = 0.7978845608028654
    return 0.5 * x * (1.0 + jnp.tanh(c * (x + 0.044715 * x * x * x)))


def _layernorm(x, gamma, beta, c_true):
    # x: (tm, Cp) f32, zero-padded beyond c_true channels.  Stats in f32 over
    # the true channel count only; padded lanes end up equal to (padded) beta
    # = 0, which the zero-padded W1 rows expect.
    inv_c = 1.0 / c_true
    mean = jnp.sum(x, axis=-1, keepdims=True) * inv_c
    xc = x - mean
    lane = jax.lax.broadcasted_iota(jnp.int32, (1, x.shape[-1]), 1)
    xc = jnp.where(lane < c_true, xc, 0.0)
    var = jnp.sum(xc * xc, axis=-1, keepdims=True) * inv_c
    return xc * jax.lax.rsqrt(var + 1e-5) * gamma + beta


def _mlp_resident_kernel(x_ref, g_ref, bt_ref, w1_ref, b1_ref, w2_ref, b2_ref,
                         o_ref, xn_ref, *, c_true, n_chunks, gelu):
    # Weights fully VMEM-resident (constant index_map); loop over H chunks
    # in-kernel and accumulate fc2 directly into the f32 output block.
    xn_ref[...] = _layernorm(x_ref[...].astype(jnp.float32),
                             g_ref[...], bt_ref[...], c_true).astype(xn_ref.dtype)
    o_ref[...] = jnp.zeros_like(o_ref)

    @pl.loop(0, n_chunks)
    def _(k):
        h = jnp.dot(xn_ref[...], w1_ref[k],
                    preferred_element_type=jnp.float32)
        h = gelu(h + b1_ref[k])
        o_ref[...] += jnp.dot(h.astype(w2_ref.dtype), w2_ref[k],
                              preferred_element_type=jnp.float32)

    o_ref[...] += b2_ref[...]


def _mlp_stream_kernel(x_ref, g_ref, bt_ref, w1_ref, b1_ref, w2_ref, b2_ref,
                       o_ref, xn_ref, *, c_true, gelu):
    # Fallback: weights streamed per H-tile on the (arbitrary) k grid axis.
    k = pl.program_id(1)

    @pl.when(k == 0)
    def _():
        xn_ref[...] = _layernorm(x_ref[...].astype(jnp.float32),
                                 g_ref[...], bt_ref[...], c_true
                                 ).astype(xn_ref.dtype)
        o_ref[...] = jnp.zeros_like(o_ref)

    h = jnp.dot(xn_ref[...], w1_ref[...], preferred_element_type=jnp.float32)
    h = gelu(h + b1_ref[...])
    o_ref[...] += jnp.dot(h.astype(w2_ref.dtype), w2_ref[...],
                          preferred_element_type=jnp.float32)

    @pl.when(k == pl.num_programs(1) - 1)
    def _():
        o_ref[...] += b2_ref[...]
    # TODO(synk): add pipeline_mode=pl.Buffered(3) on the weight specs if the
    # per-k weight DMA is still exposed after the bf16 switch.


def _pad2(a, rows, cols):
    r, c = a.shape
    if r == rows and c == cols:
        return a
    return jnp.pad(a, ((0, rows - r), (0, cols - c)))


@functools.partial(
    jax.jit,
    static_argnames=("block_rows", "block_h", "compute_dtype", "exact_gelu",
                     "weights_resident"))
def mlp_pallas(x, gamma, beta, w1, b1, w2, b2, *, block_rows=512, block_h=512,
               compute_dtype=jnp.bfloat16, exact_gelu=None,
               weights_resident=None):
    """Fused LayerNorm -> fc1 -> GELU -> fc2 on a (B, L, C) input."""
    B, L, C = x.shape
    H = w1.shape[1]
    N = B * L
    f32 = jnp.float32
    cdt = jnp.dtype(compute_dtype)
    cbytes = cdt.itemsize

    if exact_gelu is None:
        exact_gelu = (cdt == jnp.dtype(jnp.float32))
    gelu = _gelu_exact if exact_gelu else _gelu_tanh

    # Lane-dense zero padding of the channel and hidden axes (exact: padded
    # gamma/beta/weights/biases are zero and gelu(0) == 0).
    Cp = _round_up(C, 128)
    Hp = _round_up(H, 128)

    # Row tile: large (arithmetic-intensity friendly), clamped for tiny N,
    # multiple of 8, split so there are >= 2 row tiles when N allows (v7x
    # shards the "parallel" row axis over its 2 TensorCores).
    tm = min(_round_up(block_rows, 8), _round_up(N, 8))
    if _round_up(N, tm) // tm < 2 and tm > 8:
        tm = max(8, _round_up(tm // 2, 8))

    # Hidden chunk: largest divisor of Hp that is a multiple of 128 and
    # <= block_h.
    m = Hp // 128
    tk_divs = [128 * d for d in range(m, 0, -1) if m % d == 0]
    tk_want = max(128, _round_up(min(block_h, Hp), 128))
    tk = next((d for d in tk_divs if d <= tk_want), 128)

    def resident_bytes(tm_, tk_):
        return (4 * tm_ * Cp * 4                  # x + out tiles, dbl-buffered f32
                + 4 * Cp * Hp * cbytes            # W1 + W2 full blocks (x2 bufs)
                + tm_ * Cp * cbytes                # xn scratch
                + tm_ * tk_ * 4                    # live fc1/GELU tile
                + 8 * Cp * 4 + 2 * Hp * cbytes)    # gamma/beta/b1/b2

    def stream_bytes(tm_, tk_):
        return (4 * tm_ * Cp * 4                  # x + out tiles, dbl-buffered f32
                + 4 * Cp * tk_ * cbytes           # W1 + W2 H-tiles, dbl-buffered
                + tm_ * Cp * cbytes                # xn scratch
                + tm_ * tk_ * 4                    # live fc1/GELU tile
                + 8 * Cp * 4 + 4 * tk_ * cbytes)

    resident_ok = resident_bytes(tm, tk) <= _VMEM_BUDGET
    if weights_resident is None:
        weights_resident = resident_ok
    else:
        weights_resident = bool(weights_resident) and resident_ok

    if not weights_resident:
        # Shrink tk (then tm) until the streaming working set fits the budget.
        for cand in tk_divs:
            if cand <= tk and stream_bytes(tm, cand) <= _VMEM_BUDGET:
                tk = cand
                break
        else:
            tk = 128
        while stream_bytes(tm, tk) > _VMEM_BUDGET and tm > 8:
            tm = max(8, _round_up(tm // 2, 8))

    Np = _round_up(N, tm)
    n_row_tiles = Np // tm
    n_chunks = Hp // tk

    # Wrapper-side packing: weights once; activations only padded when needed.
    x2 = x.reshape(N, C)
    if Np != N or Cp != C:
        x2 = jnp.pad(x2, ((0, Np - N), (0, Cp - C)))
    g2 = _pad2(gamma.reshape(1, C).astype(f32), 1, Cp)
    bt2 = _pad2(beta.reshape(1, C).astype(f32), 1, Cp)
    w1p = _pad2(w1.astype(cdt), Cp, Hp)
    w2p = _pad2(w2.astype(cdt), Hp, Cp)
    b1p = _pad2(b1.reshape(1, H).astype(f32), 1, Hp)
    b2p = _pad2(b2.reshape(1, C).astype(f32), 1, Cp)

    gelu_trans = 2 if exact_gelu else 1           # exp+recip vs tanh per element
    weight_bytes = 2 * Cp * Hp * cbytes * (1 if weights_resident else n_row_tiles)
    cost = pl.CostEstimate(
        flops=4 * N * C * H,
        transcendentals=gelu_trans * N * H + N,
        bytes_accessed=int(2 * Np * Cp * 4 + weight_bytes + (3 * Cp + Hp) * 4),
    )

    if weights_resident:
        # Hidden chunk is the leading dim so the kernel can index it
        # dynamically; full blocks + constant index_map => fetched once.
        w1r = w1p.reshape(Cp, n_chunks, tk).transpose(1, 0, 2)
        w2r = w2p.reshape(n_chunks, tk, Cp)
        b1r = b1p.reshape(n_chunks, 1, tk)
        kernel = functools.partial(_mlp_resident_kernel, c_true=C,
                                   n_chunks=n_chunks, gelu=gelu)
        grid = (n_row_tiles,)
        in_specs = [
            pl.BlockSpec((tm, Cp), lambda i: (i, 0)),               # x row tile
            pl.BlockSpec((1, Cp), lambda i: (0, 0)),                # gamma
            pl.BlockSpec((1, Cp), lambda i: (0, 0)),                # beta
            pl.BlockSpec((n_chunks, Cp, tk), lambda i: (0, 0, 0)),  # W1 (resident)
            pl.BlockSpec((n_chunks, 1, tk), lambda i: (0, 0, 0)),   # b1
            pl.BlockSpec((n_chunks, tk, Cp), lambda i: (0, 0, 0)),  # W2 (resident)
            pl.BlockSpec((1, Cp), lambda i: (0, 0)),                # b2
        ]
        out_specs = pl.BlockSpec((tm, Cp), lambda i: (i, 0))
        dims = ("parallel",)
        args = (x2, g2, bt2, w1r, b1r, w2r, b2p)
    else:
        kernel = functools.partial(_mlp_stream_kernel, c_true=C, gelu=gelu)
        grid = (n_row_tiles, n_chunks)
        in_specs = [
            pl.BlockSpec((tm, Cp), lambda i, k: (i, 0)),   # x row tile
            pl.BlockSpec((1, Cp), lambda i, k: (0, 0)),    # gamma
            pl.BlockSpec((1, Cp), lambda i, k: (0, 0)),    # beta
            pl.BlockSpec((Cp, tk), lambda i, k: (0, k)),   # W1 H-tile
            pl.BlockSpec((1, tk), lambda i, k: (0, k)),    # b1 H-tile
            pl.BlockSpec((tk, Cp), lambda i, k: (k, 0)),   # W2 H-tile
            pl.BlockSpec((1, Cp), lambda i, k: (0, 0)),    # b2
        ]
        out_specs = pl.BlockSpec((tm, Cp), lambda i, k: (i, 0))
        dims = ("parallel", "arbitrary")
        args = (x2, g2, bt2, w1p, b1p, w2p, b2p)

    out = pl.pallas_call(
        kernel,
        out_shape=jax.ShapeDtypeStruct((Np, Cp), f32),
        grid_spec=pltpu.PrefetchScalarGridSpec(
            num_scalar_prefetch=0,
            grid=grid,
            in_specs=in_specs,
            out_specs=out_specs,
            scratch_shapes=[pltpu.VMEM((tm, Cp), cdt)],   # cached LayerNorm tile
        ),
        compiler_params=pltpu.CompilerParams(
            dimension_semantics=dims,
            vmem_limit_bytes=_VMEM_LIMIT),
        cost_estimate=cost,
    )(*args)

    if Np != N or Cp != C:
        out = out[:N, :C]
    return out.reshape(B, L, C).astype(x.dtype)


def mlp_reference(x, gamma, beta, w1, b1, w2, b2):
    xf = x.astype(jnp.float32)
    mean = jnp.mean(xf, axis=-1, keepdims=True)
    var = jnp.mean((xf - mean) ** 2, axis=-1, keepdims=True)
    xn = (xf - mean) * jax.lax.rsqrt(var + 1e-5) * gamma + beta
    h = jax.nn.gelu(xn @ w1 + b1, approximate=False)
    return (h @ w2 + b2).astype(x.dtype)


if __name__ == "__main__":
    def make_inputs(key, B, L, C, widening):
        H = widening * C
        kx, kg, kb, kw1, kb1, kw2, kb2 = jax.random.split(key, 7)
        x = jax.random.normal(kx, (B, L, C), dtype=jnp.float32)
        gamma = 1.0 + 0.1 * jax.random.normal(kg, (C,), dtype=jnp.float32)
        beta = 0.1 * jax.random.normal(kb, (C,), dtype=jnp.float32)
        # PyTorch Linear stores weight as (out, in); created here as (in, out).
        w1 = 0.05 * jax.random.normal(kw1, (C, H), dtype=jnp.float32)
        b1 = 0.05 * jax.random.normal(kb1, (H,), dtype=jnp.float32)
        w2 = 0.05 * jax.random.normal(kw2, (H, C), dtype=jnp.float32)
        b2 = 0.05 * jax.random.normal(kb2, (C,), dtype=jnp.float32)
        return (x, gamma, beta, w1, b1, w2, b2)

    key = jax.random.PRNGKey(0)
    k1, k2 = jax.random.split(key)

    # MLP(num_channels=32, widening_factor=4) on a (2, 8, 32) input.
    args = make_inputs(k1, B=2, L=8, C=32, widening=4)
    ref = mlp_reference(*args)

    # 1) Exact path: f32 operands + exact-erf GELU (PyTorch-matching numerics).
    out_exact = jax.block_until_ready(
        mlp_pallas(*args, compute_dtype=jnp.float32))
    assert out_exact.shape == (2, 8, 32)
    assert jnp.allclose(out_exact, ref, atol=2e-5, rtol=2e-5), (
        f"exact path max err {jnp.max(jnp.abs(out_exact - ref))}")

    # 2) Fast default path: bf16 MXU operands + tanh GELU, f32 accumulation.
    out_fast = jax.block_until_ready(mlp_pallas(*args))
    assert jnp.allclose(out_fast, ref, atol=3e-2, rtol=3e-2), (
        f"fast path max err {jnp.max(jnp.abs(out_fast - ref))}")

    # 3) Streaming-weights fallback (forced): 2 row tiles x 2 H-tiles with the
    #    fc2 accumulation carried in the revisited output block.
    args2 = make_inputs(k2, B=2, L=24, C=64, widening=4)
    ref2 = mlp_reference(*args2)
    out_stream = jax.block_until_ready(
        mlp_pallas(*args2, compute_dtype=jnp.float32,
                   weights_resident=False, block_h=128))
    assert jnp.allclose(out_stream, ref2, atol=2e-5, rtol=2e-5), (
        f"stream path max err {jnp.max(jnp.abs(out_stream - ref2))}")

    print("KERNEL_OK")
</pallas_src>

<mosaic_0001>
module attributes {stable_mosaic.version = 11 : i64} {
  func.func @_mlp_resident_kernel(%arg0: i32, %arg1: memref<8x128xf32, #tpu.memory_space<vmem>>, %arg2: memref<1x128xf32, #tpu.memory_space<vmem>>, %arg3: memref<1x128xf32, #tpu.memory_space<vmem>>, %arg4: memref<1x128x128xf32, #tpu.memory_space<vmem>>, %arg5: memref<1x1x128xf32, #tpu.memory_space<vmem>>, %arg6: memref<1x128x128xf32, #tpu.memory_space<vmem>>, %arg7: memref<1x128xf32, #tpu.memory_space<vmem>>, %arg8: memref<8x128xf32, #tpu.memory_space<vmem>>, %arg9: memref<8x128xf32, #tpu.memory_space<vmem>>) attributes {dimension_semantics = [#tpu.dimension_semantics<parallel>], iteration_bounds = array<i64: 2>, scalar_prefetch = 0 : i64, scratch_operands = 1 : i64, tpu.core_type = #tpu.core_type<tc>, window_params = [{transform_indices = @transform_0, window_bounds = array<i64: 8, 128>}, {pipeline_mode = #tpu.pipeline_mode<synchronous>, transform_indices = @transform_1, window_bounds = array<i64: 1, 128>}, {pipeline_mode = #tpu.pipeline_mode<synchronous>, transform_indices = @transform_2, window_bounds = array<i64: 1, 128>}, {pipeline_mode = #tpu.pipeline_mode<synchronous>, transform_indices = @transform_3, window_bounds = array<i64: 1, 128, 128>}, {pipeline_mode = #tpu.pipeline_mode<synchronous>, transform_indices = @transform_4, window_bounds = array<i64: 1, 1, 128>}, {pipeline_mode = #tpu.pipeline_mode<synchronous>, transform_indices = @transform_5, window_bounds = array<i64: 1, 128, 128>}, {pipeline_mode = #tpu.pipeline_mode<synchronous>, transform_indices = @transform_6, window_bounds = array<i64: 1, 128>}, {transform_indices = @transform_7, window_bounds = array<i64: 8, 128>}]} {
    %c0 = arith.constant 0 : index
    %c0_0 = arith.constant 0 : index
    %0 = vector.load %arg1[%c0, %c0_0] : memref<8x128xf32, #tpu.memory_space<vmem>>, vector<8x128xf32>
    %c0_1 = arith.constant 0 : index
    %c0_2 = arith.constant 0 : index
    %1 = vector.load %arg2[%c0_1, %c0_2] : memref<1x128xf32, #tpu.memory_space<vmem>>, vector<1x128xf32>
    %c0_3 = arith.constant 0 : index
    %c0_4 = arith.constant 0 : index
    %2 = vector.load %arg3[%c0_3, %c0_4] : memref<1x128xf32, #tpu.memory_space<vmem>>, vector<1x128xf32>
    %cst = arith.constant dense<0.000000e+00> : vector<8xf32>
    %3 = vector.multi_reduction <add>, %0, %cst [1] : vector<8x128xf32> to vector<8xf32>
    %4 = vector.shape_cast %3 : vector<8xf32> to vector<8x1xf32>
    %cst_5 = arith.constant 3.125000e-02 : f32
    %5 = vector.broadcast %cst_5 : f32 to vector<8x1xf32>
    %6 = arith.mulf %4, %5 : vector<8x1xf32>
    %7 = vector.broadcast %6 : vector<8x1xf32> to vector<8x128xf32>
    %8 = arith.subf %0, %7 : vector<8x128xf32>
    %9 = tpu.iota {dimensions = array<i32: 1>} : vector<1x128xi32>
    %c32_i32 = arith.constant 32 : i32
    %10 = vector.broadcast %c32_i32 : i32 to vector<1x128xi32>
    %11 = arith.cmpi slt, %9, %10 : vector<1x128xi32>
    %cst_6 = arith.constant 0.000000e+00 : f32
    %12 = vector.shape_cast %11 : vector<1x128xi1> to vector<1x128xi1>
    %13 = vector.broadcast %12 : vector<1x128xi1> to vector<8x128xi1>
    %14 = vector.broadcast %cst_6 : f32 to vector<8x128xf32>
    %15 = arith.select %13, %8, %14 : vector<8x128xi1>, vector<8x128xf32>
    %16 = arith.mulf %15, %15 : vector<8x128xf32>
    %cst_7 = arith.constant dense<0.000000e+00> : vector<8xf32>
    %17 = vector.multi_reduction <add>, %16, %cst_7 [1] : vector<8x128xf32> to vector<8xf32>
    %18 = vector.shape_cast %17 : vector<8xf32> to vector<8x1xf32>
    %cst_8 = arith.constant 3.125000e-02 : f32
    %19 = vector.broadcast %cst_8 : f32 to vector<8x1xf32>
    %20 = arith.mulf %18, %19 : vector<8x1xf32>
    %cst_9 = arith.constant 9.99999974E-6 : f32
    %21 = vector.broadcast %cst_9 : f32 to vector<8x1xf32>
    %22 = arith.addf %20, %21 : vector<8x1xf32>
    %23 = math.rsqrt %22 : vector<8x1xf32>
    %24 = vector.broadcast %23 : vector<8x1xf32> to vector<8x128xf32>
    %25 = arith.mulf %15, %24 : vector<8x128xf32>
    %26 = vector.broadcast %1 : vector<1x128xf32> to vector<8x128xf32>
    %27 = arith.mulf %25, %26 : vector<8x128xf32>
    %28 = vector.broadcast %2 : vector<1x128xf32> to vector<8x128xf32>
    %29 = arith.addf %27, %28 : vector<8x128xf32>
    %c0_10 = arith.constant 0 : index
    %c0_11 = arith.constant 0 : index
    %30 = vector.load %arg9[%c0_10, %c0_11] : memref<8x128xf32, #tpu.memory_space<vmem>>, vector<8x128xf32>
    tpu.vector_store %arg9[%c0_10, %c0_11], %29 {strides = array<i32>} : memref<8x128xf32, #tpu.memory_space<vmem>>, vector<8x128xf32>,
    %cst_12 = arith.constant 0.000000e+00 : f32
    %31 = vector.broadcast %cst_12 : f32 to vector<8x128xf32>
    %c0_13 = arith.constant 0 : index
    %c0_14 = arith.constant 0 : index
    %32 = vector.load %arg8[%c0_13, %c0_14] : memref<8x128xf32, #tpu.memory_space<vmem>>, vector<8x128xf32>
    tpu.vector_store %arg8[%c0_13, %c0_14], %31 {strides = array<i32>} : memref<8x128xf32, #tpu.memory_space<vmem>>, vector<8x128xf32>,
    %c0_i32 = arith.constant 0 : i32
    %c1_i32 = arith.constant 1 : i32
    %33 = arith.muli %c0_i32, %c1_i32 : i32
    %c0_i32_15 = arith.constant 0 : i32
    %34 = arith.addi %c0_i32_15, %33 : i32
    %c0_16 = arith.constant 0 : index
    %c0_17 = arith.constant 0 : index
    %35 = vector.load %arg9[%c0_16, %c0_17] : memref<8x128xf32, #tpu.memory_space<vmem>>, vector<8x128xf32>
    %36 = arith.index_cast %34 : i32 to index
    %c0_18 = arith.constant 0 : index
    %c0_19 = arith.constant 0 : index
    %37 = vector.load %arg4[%36, %c0_18, %c0_19] : memref<1x128x128xf32, #tpu.memory_space<vmem>>, vector<1x128x128xf32>
    %38 = vector.shape_cast %37 : vector<1x128x128xf32> to vector<128x128xf32>
    %cst_20 = arith.constant dense<0.000000e+00> : vector<8x128xf32>
    %39 = tpu.matmul %35, %38, %cst_20 {dimension_numbers = #tpu.dot_dimension_numbers<[1], [0], [0], [1], [0, 0, 1, 1], [], []>} : vector<8x128xf32>, vector<128x128xf32>, vector<8x128xf32> -> vector<8x128xf32>
    %40 = arith.index_cast %34 : i32 to index
    %c0_21 = arith.constant 0 : index
    %c0_22 = arith.constant 0 : index
    %41 = vector.load %arg5[%40, %c0_21, %c0_22] : memref<1x1x128xf32, #tpu.memory_space<vmem>>, vector<1x1x128xf32>
    %42 = vector.shape_cast %41 : vector<1x1x128xf32> to vector<1x128xf32>
    %43 = vector.broadcast %42 : vector<1x128xf32> to vector<8x128xf32>
    %44 = arith.addf %39, %43 : vector<8x128xf32>
    %cst_23 = arith.constant 5.000000e-01 : f32
    %45 = vector.broadcast %cst_23 : f32 to vector<8x128xf32>
    %46 = arith.mulf %45, %44 : vector<8x128xf32>
    %cst_24 = arith.constant 0.707106769 : f32
    %47 = vector.broadcast %cst_24 : f32 to vector<8x128xf32>
    %48 = arith.mulf %44, %47 : vector<8x128xf32>
    %cst_25 = arith.constant 0.000000e+00 : f32
    %49 = vector.broadcast %cst_25 : f32 to vector<8x128xf32>
    %50 = arith.cmpf olt, %48, %49 : vector<8x128xf32>
    %cst_26 = arith.constant -1.000000e+00 : f32
    %cst_27 = arith.constant 1.000000e+00 : f32
    %51 = vector.broadcast %cst_26 : f32 to vector<8x128xf32>
    %52 = vector.broadcast %cst_27 : f32 to vector<8x128xf32>
    %53 = arith.select %50, %51, %52 : vector<8x128xi1>, vector<8x128xf32>
    %54 = math.absf %48 : vector<8x128xf32>
    %cst_28 = arith.constant 0.327591091 : f32
    %55 = vector.broadcast %cst_28 : f32 to vector<8x128xf32>
    %56 = arith.mulf %55, %54 : vector<8x128xf32>
    %cst_29 = arith.constant 1.000000e+00 : f32
    %57 = vector.broadcast %cst_29 : f32 to vector<8x128xf32>
    %58 = arith.addf %57, %56 : vector<8x128xf32>
    %59 = tpu.reciprocal %58 {approx = true} : vector<8x128xf32> -> vector<8x128xf32>
    %60 = arith.mulf %58, %59 : vector<8x128xf32>
    %cst_30 = arith.constant 2.000000e+00 : f32
    %61 = vector.broadcast %cst_30 : f32 to vector<8x128xf32>
    %62 = arith.subf %61, %60 : vector<8x128xf32>
    %63 = arith.mulf %59, %62 : vector<8x128xf32>
    %cst_31 = arith.constant 1.06140542 : f32
    %64 = vector.broadcast %cst_31 : f32 to vector<8x128xf32>
    %65 = arith.mulf %63, %64 : vector<8x128xf32>
    %cst_32 = arith.constant -1.45315206 : f32
    %66 = vector.broadcast %cst_32 : f32 to vector<8x128xf32>
    %67 = arith.addf %66, %65 : vector<8x128xf32>
    %68 = arith.mulf %63, %67 : vector<8x128xf32>
    %cst_33 = arith.constant 1.42141378 : f32
    %69 = vector.broadcast %cst_33 : f32 to vector<8x128xf32>
    %70 = arith.addf %69, %68 : vector<8x128xf32>
    %71 = arith.mulf %63, %70 : vector<8x128xf32>
    %cst_34 = arith.constant -0.284496725 : f32
    %72 = vector.broadcast %cst_34 : f32 to vector<8x128xf32>
    %73 = arith.addf %72, %71 : vector<8x128xf32>
    %74 = arith.mulf %63, %73 : vector<8x128xf32>
    %cst_35 = arith.constant 0.254829586 : f32
    %75 = vector.broadcast %cst_35 : f32 to vector<8x128xf32>
    %76 = arith.addf %75, %74 : vector<8x128xf32>
    %77 = arith.mulf %63, %76 : vector<8x128xf32>
    %cst_36 = arith.constant 0.000000e+00 : f32
    %78 = vector.broadcast %cst_36 : f32 to vector<8x128xf32>
    %79 = arith.subf %78, %54 : vector<8x128xf32>
    %80 = arith.mulf %79, %54 : vector<8x128xf32>
    %81 = math.exp %80 : vector<8x128xf32>
    %82 = arith.mulf %77, %81 : vector<8x128xf32>
    %cst_37 = arith.constant 1.000000e+00 : f32
    %83 = vector.broadcast %cst_37 : f32 to vector<8x128xf32>
    %84 = arith.subf %83, %82 : vector<8x128xf32>
    %85 = arith.mulf %53, %84 : vector<8x128xf32>
    %cst_38 = arith.constant 1.000000e+00 : f32
    %86 = vector.broadcast %cst_38 : f32 to vector<8x128xf32>
    %87 = arith.addf %86, %85 : vector<8x128xf32>
    %88 = arith.mulf %46, %87 : vector<8x128xf32>
    %c0_39 = arith.constant 0 : index
    %c0_40 = arith.constant 0 : index
    %89 = vector.load %arg8[%c0_39, %c0_40] : memref<8x128xf32, #tpu.memory_space<vmem>>, vector<8x128xf32>
    %90 = arith.index_cast %34 : i32 to index
    %c0_41 = arith.constant 0 : index
    %c0_42 = arith.constant 0 : index
    %91 = vector.load %arg6[%90, %c0_41, %c0_42] : memref<1x128x128xf32, #tpu.memory_space<vmem>>, vector<1x128x128xf32>
    %92 = vector.shape_cast %91 : vector<1x128x128xf32> to vector<128x128xf32>
    %cst_43 = arith.constant dense<0.000000e+00> : vector<8x128xf32>
    %93 = tpu.matmul %88, %92, %cst_43 {dimension_numbers = #tpu.dot_dimension_numbers<[1], [0], [0], [1], [0, 0, 1, 1], [], []>} : vector<8x128xf32>, vector<128x128xf32>, vector<8x128xf32> -> vector<8x128xf32>
    %94 = arith.addf %89, %93 : vector<8x128xf32>
    %c0_44 = arith.constant 0 : index
    %c0_45 = arith.constant 0 : index
    %95 = vector.load %arg8[%c0_44, %c0_45] : memref<8x128xf32, #tpu.memory_space<vmem>>, vector<8x128xf32>
    tpu.vector_store %arg8[%c0_44, %c0_45], %94 {strides = array<i32>} : memref<8x128xf32, #tpu.memory_space<vmem>>, vector<8x128xf32>,
    %c1_i32_46 = arith.constant 1 : i32
    %c0_47 = arith.constant 0 : index
    %c0_48 = arith.constant 0 : index
    %96 = vector.load %arg8[%c0_47, %c0_48] : memref<8x128xf32, #tpu.memory_space<vmem>>, vector<8x128xf32>
    %c0_49 = arith.constant 0 : index
    %c0_50 = arith.constant 0 : index
    %97 = vector.load %arg7[%c0_49, %c0_50] : memref<1x128xf32, #tpu.memory_space<vmem>>, vector<1x128xf32>
    %98 = vector.broadcast %97 : vector<1x128xf32> to vector<8x128xf32>
    %99 = arith.addf %96, %98 : vector<8x128xf32>
    %c0_51 = arith.constant 0 : index
    %c0_52 = arith.constant 0 : index
    %100 = vector.load %arg8[%c0_51, %c0_52] : memref<8x128xf32, #tpu.memory_space<vmem>>, vector<8x128xf32>
    tpu.vector_store %arg8[%c0_51, %c0_52], %99 {strides = array<i32>} : memref<8x128xf32, #tpu.memory_space<vmem>>, vector<8x128xf32>,
    return
  }
  func.func @transform_0(%arg0: i32) -> (i32, i32) {
    %c0_i32 = arith.constant 0 : i32
    %c0_i32_0 = arith.constant 0 : i32
    return %arg0, %c0_i32 : i32, i32
  }
  func.func @transform_1(%arg0: i32) -> (i32, i32) {
    %c0_i32 = arith.constant 0 : i32
    %c0_i32_0 = arith.constant 0 : i32
    %c0_i32_1 = arith.constant 0 : i32
    return %c0_i32, %c0_i32_0 : i32, i32
  }
  func.func @transform_2(%arg0: i32) -> (i32, i32) {
    %c0_i32 = arith.constant 0 : i32
    %c0_i32_0 = arith.constant 0 : i32
    %c0_i32_1 = arith.constant 0 : i32
    return %c0_i32, %c0_i32_0 : i32, i32
  }
  func.func @transform_3(%arg0: i32) -> (i32, i32, i32) {
    %c0_i32 = arith.constant 0 : i32
    %c0_i32_0 = arith.constant 0 : i32
    %c0_i32_1 = arith.constant 0 : i32
    %c0_i32_2 = arith.constant 0 : i32
    return %c0_i32, %c0_i32_0, %c0_i32_1 : i32, i32, i32
  }
  func.func @transform_4(%arg0: i32) -> (i32, i32, i32) {
    %c0_i32 = arith.constant 0 : i32
    %c0_i32_0 = arith.constant 0 : i32
    %c0_i32_1 = arith.constant 0 : i32
    %c0_i32_2 = arith.constant 0 : i32
    return %c0_i32, %c0_i32_0, %c0_i32_1 : i32, i32, i32
  }
  func.func @transform_5(%arg0: i32) -> (i32, i32, i32) {
    %c0_i32 = arith.constant 0 : i32
    %c0_i32_0 = arith.constant 0 : i32
    %c0_i32_1 = arith.constant 0 : i32
    %c0_i32_2 = arith.constant 0 : i32
    return %c0_i32, %c0_i32_0, %c0_i32_1 : i32, i32, i32
  }
  func.func @transform_6(%arg0: i32) -> (i32, i32) {
    %c0_i32 = arith.constant 0 : i32
    %c0_i32_0 = arith.constant 0 : i32
    %c0_i32_1 = arith.constant 0 : i32
    return %c0_i32, %c0_i32_0 : i32, i32
  }
  func.func @transform_7(%arg0: i32) -> (i32, i32) {
    %c0_i32 = arith.constant 0 : i32
    %c0_i32_0 = arith.constant 0 : i32
    return %arg0, %c0_i32 : i32, i32
  }
}

</mosaic_0001>

<bundles_post_ra>
// kernel: mlp_pallas.1
= control target key start
LH: loop header
LB: loop body
LE: loop exit
PB: predicated region body
PF: predicated region fallthrough
CT: control target
= control target key end

     0   :  { %s560_s24 = smov 0   ;;  %s692_s0 = inlined_call_operand.vmem [shape: f32[16,128], index: 0, kind: input, shape index: {}]   ;;  %s693_s1 = inlined_call_operand.vmem [shape: f32[1,128], index: 1, kind: input, shape index: {}]   ;;  %s694_s2 = inlined_call_operand.vmem [shape: f32[1,128], index: 2, kind: input, shape index: {}]   ;;  %s695_s3 = inlined_call_operand.vmem [shape: f32[1,128,128], index: 3, kind: input, shape index: {}]   ;;  %s696_s4 = inlined_call_operand.vmem [shape: f32[1,1,128], index: 4, kind: input, shape index: {}]   ;;  %s697_s5 = inlined_call_operand.vmem [shape: f32[1,128,128], index: 5, kind: input, shape index: {}]   ;;  %s698_s6 = inlined_call_operand.vmem [shape: f32[1,128], index: 6, kind: input, shape index: {}]   ;;  %s699_s7 = inlined_call_operand.vmem [shape: f32[16,128], index: 7, kind: output, shape index: {}]  }
   0x1 LB: > { %s482_s25 = sadd.s32 4294967295, %s517_s24   ;;  %p486_p0 = scmp.ge.s32.totalorder %s517_s24, 1  ;;  %s517_s24 = sphi %s560_s24, %s17_s24  }
   0x2   : > { %p236_p1 = scmp.lt.s32.totalorder %s517_s24, 3 }
   0x4   : > { %p237_p2 = pnand %p486_p0, %p236_p1 }
   0x5   : > { %p266_p3 = scmp.lt.s32.totalorder (!%p237_p2), %s482_s25, 1 }
   0x6   : > { %240 = sbr.rel (%p237_p2) target bundleno = 588 (0x24c), region = 48 }
   0xb   : > { %s701_s25 = smov (!%p266_p3, %s482_s25), 1  ;;  %v329_v1 = vld [vmem:[%s695_s3 + $0x78] sm:$0xff]  ;;  %v328_v2 = vld [vmem:[%s695_s3 + $0x70] sm:$0xff]  ;;  %v281_v3 = vlaneseq  ;;  %v327_v10 = vld [vmem:[%s695_s3 + $0x68] sm:$0xff] }
   0xc   : > { %s487_s26 = sshll.u32 %s701_s25, 3  ;;  %334 = vmatpush.msra.mxu0 %v329_v1  ;;  %v326_v11 = vld [vmem:[%s695_s3 + $0x60] sm:$0xff]  ;;  %v325_v12 = vld [vmem:[%s695_s3 + $0x58] sm:$0xff]  ;;  %v324_v13 = vld [vmem:[%s695_s3 + $0x50] sm:$0xff] }
   0xd   : > { %s269_s29 = scalar_lea.vmem %s692_s0, %s487_s26  ;;  %v282_v4 = vand.u32 127, %v281_v3  ;;  %v323_v14 = vld [vmem:[%s695_s3 + $0x48] sm:$0xff]  ;;  %v322_v15 = vld [vmem:[%s695_s3 + $0x40] sm:$0xff]  ;;  %v321_v16 = vld [vmem:[%s695_s3 + $0x38] sm:$0xff]  ;;  %s273_s21 = scalar_lea.vmem %s699_s7, %s487_s26 }
   0xe   : > { %v274_v0 = vld [vmem:[%s269_s29] sm:$0xff]  ;;  %335 = vmatpush.msra.mxu0 %v328_v2  ;;  %v320_v17 = vld [vmem:[%s695_s3 + $0x30] sm:$0xff]  ;;  %v319_v18 = vld [vmem:[%s695_s3 + $0x28] sm:$0xff] }
   0xf   : > { %277 = vadd.xlane.f32.xlu0 %v274_v0  ;;  %vm283_vm0 = vcmp.lt.s32.totalorder %v282_v4, 32  ;;  %v318_v19 = vld [vmem:[%s695_s3 + $0x20] sm:$0xff]  ;;  %v317_v20 = vld [vmem:[%s695_s3 + $0x18] sm:$0xff]  ;;  %v316_v21 = vld [vmem:[%s695_s3 + $0x10] sm:$0xff] }
  0x10   : > { %336 = vmatpush.msra.mxu0 %v327_v10  ;;  %v315_v22 = vld [vmem:[%s695_s3 + $0x8] sm:$0xff]  ;;  %v314_v23 = vld [vmem:[%s695_s3] sm:$0xff]  ;;  %v399_v39 = vld [vmem:[%s697_s5 + $0x78] sm:$0xff] }
  0x11   : > { %v501_v33 = vld [vmem:[%s693_s1] ss:$0 sm:$0xff]  ;;  %400 = vmatpush.msra.mxu1 %v399_v39  ;;  %v398_v40 = vld [vmem:[%s697_s5 + $0x70] sm:$0xff]  ;;  %v397_v41 = vld [vmem:[%s697_s5 + $0x68] sm:$0xff] }
  0x12   : > { %337 = vmatpush.msra.mxu0 %v326_v11  ;;  %v502_v36 = vld [vmem:[%s694_s2] ss:$0 sm:$0xff]  ;;  %v395_v43 = vld [vmem:[%s697_s5 + $0x58] sm:$0xff]  ;;  %v394_v44 = vld [vmem:[%s697_s5 + $0x50] sm:$0xff] }
  0x13   : > { %401 = vmatpush.msra.mxu1 %v398_v40  ;;  %v396_v42 = vld [vmem:[%s697_s5 + $0x60] sm:$0xff]  ;;  %v393_v46 = vld [vmem:[%s697_s5 + $0x48] sm:$0xff]  ;;  %v391_v50 = vld [vmem:[%s697_s5 + $0x38] sm:$0xff] }
  0x14   : > { %338 = vmatpush.msra.mxu0 %v325_v12  ;;  %v503_v45 = vld [vmem:[%s696_s4] ss:$0 sm:$0xff]  ;;  %v390_v52 = vld [vmem:[%s697_s5 + $0x30] sm:$0xff]  ;;  %v389_v54 = vld [vmem:[%s697_s5 + $0x28] sm:$0xff] }
  0x15   : > { %402 = vmatpush.msra.mxu1 %v397_v41  ;;  %v392_v48 = vld [vmem:[%s697_s5 + $0x40] sm:$0xff]  ;;  %v387_v58 = vld [vmem:[%s697_s5 + $0x18] sm:$0xff]  ;;  %v386_v59 = vld [vmem:[%s697_s5 + $0x10] sm:$0xff] }
  0x16   : > { %339 = vmatpush.msra.mxu0 %v324_v13  ;;  %v388_v56 = vld [vmem:[%s697_s5 + $0x20] sm:$0xff]  ;;  %v385_v60 = vld [vmem:[%s697_s5 + $0x8] sm:$0xff] }
  0x17   : > { %403 = vmatpush.msra.mxu1 %v396_v42  ;;  %v384_v61 = vld [vmem:[%s697_s5] sm:$0xff] }
  0x18   : > { %340 = vmatpush.msra.mxu0 %v323_v14 }
  0x19   : > { %404 = vmatpush.msra.mxu1 %v395_v43 }
  0x1a   : > { %341 = vmatpush.msra.mxu0 %v322_v15 }
  0x1b   : > { %405 = vmatpush.msra.mxu1 %v394_v44 }
  0x1c   : > { %342 = vmatpush.msra.mxu0 %v321_v16 }
  0x1d   : > { %406 = vmatpush.msra.mxu1 %v393_v46 }
  0x1e   : > { %343 = vmatpush.msra.mxu0 %v320_v17  ;;  %v519_v17 = vmov 1.0  }
  0x1f   : > { %407 = vmatpush.msra.mxu1 %v392_v48 }
  0x20   : > { %344 = vmatpush.msra.mxu0 %v319_v18 }
  0x21   : > { %408 = vmatpush.msra.mxu1 %v391_v50 }
  0x22   : > { %345 = vmatpush.msra.mxu0 %v318_v19 }
  0x23   : > { %409 = vmatpush.msra.mxu1 %v390_v52 }
  0x24   : > { %346 = vmatpush.msra.mxu0 %v317_v20 }
  0x25   : > { %410 = vmatpush.msra.mxu1 %v389_v54 }
  0x26   : > { %347 = vmatpush.msra.mxu0 %v316_v21 }
  0x27   : > { %411 = vmatpush.msra.mxu1 %v388_v56 }
  0x28   : > { %348 = vmatpush.msra.mxu0 %v315_v22 }
  0x29   : > { %412 = vmatpush.msra.mxu1 %v387_v58 }
  0x2a   : > { %349 = vmatpush.msra.mxu0 %v314_v23  ;;  %v504_v23 = vld [vmem:[%s698_s6] ss:$0 sm:$0xff] }
  0x2b   : > { %413 = vmatpush.msra.mxu1 %v386_v59 }
  0x2d   : > { %414 = vmatpush.msra.mxu1 %v385_v60 }
  0x2f   : > { %415 = vmatpush.msra.mxu1 %v384_v61 }
  0x82   : > { %v278_v5 = vpop.xlane.xlu0 %277 }
  0x83   : > { %v279_v6 = vmul.f32 0.03125, %v278_v5 }
  0x85   : > { %v280_v7 = vsub.f32 %v274_v0, %v279_v6 }
  0x87   : > { %v286_v8 = vsel %vm283_vm0, %v280_v7, 0.0 }
  0x88   : > { %v287_v9 = vmul.f32 %v286_v8, %v286_v8 }
  0x8a   : > { %288 = vadd.xlane.f32.xlu0 %v287_v9 }
  0xfd   : > { %v289_v24 = vpop.xlane.xlu0 %288 }
  0xfe   : > { %v290_v25 = vmul.f32 0.03125, %v289_v24 }
 0x100   : > { %v291_v26 = vadd.f32 1e-05, %v290_v25 }
 0x102   : > { %505 = vrsqrt.f32 %v291_v26  ;;  %vm298_vm2 = vweird.f32 %v291_v26 }
 0x108   : > { %v506_v27 = vpop.eup %505 }
 0x109   : > { %v293_v28 = vmul.f32 %v506_v27, %v291_v26  ;;  %vm299_vm1 = vweird.f32 %v506_v27 }
 0x10a   : > { %vm300_vm3 = vmor %vm298_vm2, %vm299_vm1 }
 0x10b   : > { %v294_v29 = vmul.f32 %v506_v27, %v293_v28 }
 0x10d   : > { %v295_v30 = vmul.f32 0.5, %v294_v29 }
 0x10f   : > { %v296_v31 = vsub.f32 1.5, %v295_v30 }
 0x111   : > { %v297_v32 = vmul.f32 %v506_v27, %v296_v31 }
 0x113   : > { %v301_v34 = vsel %vm300_vm3, %v506_v27, %v297_v32 }
 0x114   : > { %v302_v35 = vmul.f32 %v301_v34, %v286_v8 }
 0x116   : > { %v306_v37 = vmul.f32 %v501_v33, %v302_v35 }
 0x118   : > { %v310_v38 = vadd.f32 %v502_v36, %v306_v37 }
 0x11a   : > { %350 = vmatmul.f32.vlgmr.msra.gmra.mxu0 %v310_v38 }
 0x197   : > { %v351_v47 = vpop.f32.mrf.mxu0 }
 0x198   : > { %v352_v49 = vadd.f32 %v503_v45, %v351_v47 }
 0x19a   : > { %v355_v51 = vmul.f32 0.70710677, %v352_v49  ;;  %v354_v20 = vmul.f32 0.5, %v352_v49 }
 0x19c   : > { %v358_v53 = vand.u32 2147483647, %v355_v51  ;;  %vm356_vm4 = vcmp.lt.f32.partialorder %v355_v51, 0.0 }
 0x19d   : > { %v357_v18 = vsel %vm356_vm4, -1.0, %v519_v17 }
 0x19e   : > { %v359_v55 = vmul.f32 0.3275911, %v358_v53  ;;  %v374_v2 = vsub.f32 0.0, %v358_v53 }
 0x1a0   : > { %v360_v57 = vadd.f32 1.0, %v359_v55  ;;  %v375_v5 = vmul.f32 %v374_v2, %v358_v53 }
 0x1a2   : > { %507 = vrcp.f32 %v360_v57  ;;  %v376_v8 = vmul.f32 1.442695, %v375_v5 }
 0x1a4   : > { %509 = vpow2.f32 %v376_v8 }
 0x1a8   : > { %v508_v62 = vpop.eup %507 }
 0x1a9   : > { %v362_v63 = vmul.f32 %v508_v62, %v360_v57 }
 0x1aa   : > { %v510_v14 = vpop.eup %509 }
 0x1ab   : > { %v363_v0 = vsub.f32 2.0, %v362_v63 }
 0x1ad   : > { %v364_v1 = vmul.f32 %v508_v62, %v363_v0 }
 0x1af   : > { %v365_v3 = vmul.f32 1.0614054, %v364_v1 }
 0x1b1   : > { %v366_v4 = vadd.f32 -1.4531521, %v365_v3 }
 0x1b3   : > { %v367_v6 = vmul.f32 %v366_v4, %v364_v1 }
 0x1b5   : > { %v368_v7 = vadd.f32 1.4214138, %v367_v6 }
 0x1b7   : > { %v369_v9 = vmul.f32 %v368_v7, %v364_v1 }
 0x1b9   : > { %v370_v10 = vadd.f32 -0.28449672, %v369_v9 }
 0x1bb   : > { %v371_v11 = vmul.f32 %v370_v10, %v364_v1 }
 0x1bd   : > { %v372_v12 = vadd.f32 0.2548296, %v371_v11 }
 0x1bf   : > { %v373_v13 = vmul.f32 %v372_v12, %v364_v1 }
 0x1c1   : > { %v378_v15 = vmul.f32 %v510_v14, %v373_v13 }
 0x1c3   : > { %v379_v16 = vsub.f32 1.0, %v378_v15 }
 0x1c5   : > { %v380_v19 = vmul.f32 %v379_v16, %v357_v18 }
 0x1c7   : > { %v381_v21 = vadd.f32 1.0, %v380_v19 }
 0x1c9   : > { %v382_v22 = vmul.f32 %v381_v21, %v354_v20 }
 0x1cb   : > { %416 = vmatmul.f32.vlgmr.msra.gmra.mxu1 %v382_v22 }
 0x248   : > { %v417_v24 = vpop.f32.mrf.mxu1 }
 0x249   : > { %v427_v25 = vadd.f32 %v504_v23, %v417_v24 }
 0x24b   : > { %428 = vst [vmem:[%s273_s21] sm:$0xff] %v427_v25 }
 0x24c PF: > { %s17_s24 = sadd.s32 1, %s517_s24  }
 0x24d   : > { %p14_p4 = scmp.ge.s32.totalorder %s17_s24, 4  }
 0x24f   :  { %16 = sbr.rel (!%p14_p4) target bundleno = 1 (0x1), region = 78 }

</bundles_post_ra>
